<compile_context>
chip_gen: v5e
topology: v5e:2x2
jax: 0.10.0
libtpu: 0.0.40
codegen_flags: <defaults>
</compile_context>

<pallas_src>
import jax
import jax.numpy as jnp
from jax.experimental import pallas as pl
from jax.experimental.pallas import tpu as pltpu


D_IN, D1, D1P, D2, D3, D_OUT = 768, 64, 128, 512, 256, 1


def nsfw_kernel(x_ref, w1_ref, b1_ref, w2_ref, b2_ref, w3_ref, b3_ref,
                w4_ref, b4_ref, o_ref):
    # Normalization is already folded into (w1, b1) by prepare_params.
    x = x_ref[...]                                                  # [TB, 768] bf16

    # linear_1 (+folded norm) + ReLU   (768 -> 128 padded)
    h = jnp.dot(x, w1_ref[...], preferred_element_type=jnp.float32) + b1_ref[...]
    h = jnp.maximum(h, 0.0)

    # linear_2 + ReLU   (128 padded -> 512)
    h = jnp.dot(h.astype(jnp.bfloat16), w2_ref[...],
                preferred_element_type=jnp.float32) + b2_ref[...]
    h = jnp.maximum(h, 0.0)

    # linear_3 + ReLU   (512 -> 256)
    h = jnp.dot(h.astype(jnp.bfloat16), w3_ref[...],
                preferred_element_type=jnp.float32) + b3_ref[...]
    h = jnp.maximum(h, 0.0)

    # linear_4 (256 -> 1) as a broadcast-multiply + lane reduction:
    # an N=1 matmul would burn a full MXU pass for one useful column.
    logits = jnp.sum(h * w4_ref[...], axis=-1, keepdims=True) + b4_ref[...]

    # Numerically stable sigmoid (avoids exp overflow for large |logits|).
    ez = jnp.exp(-jnp.abs(logits))
    inv = 1.0 / (1.0 + ez)
    o_ref[...] = jnp.where(logits >= 0, inv, ez * inv)


def prepare_params(p):
    """Fold normalization into layer 1, pad hidden dim 64->128, cast matmul
    operands to bf16 (biases and the final reduce stay f32)."""
    inv_std = 1.0 / jnp.sqrt(p["var"])                    # [1, 768]
    w1 = p["w1"] * inv_std.reshape(D_IN, 1)               # [768, 64]
    b1 = p["b1"] - (p["mean"] * inv_std) @ p["w1"]        # [1, 64]
    # Zero-pad the 64-wide hidden dim to 128 (extra cols are exactly 0 after
    # ReLU and multiply zero rows of w2, so the result is unchanged).
    w1 = jnp.pad(w1, ((0, 0), (0, D1P - D1)))
    b1 = jnp.pad(b1, ((0, 0), (0, D1P - D1)))
    w2 = jnp.pad(p["w2"], ((0, D1P - D1), (0, 0)))        # [128, 512]
    return dict(
        w1=w1.astype(jnp.bfloat16), b1=b1.astype(jnp.float32),
        w2=w2.astype(jnp.bfloat16), b2=p["b2"].astype(jnp.float32),
        w3=p["w3"].astype(jnp.bfloat16), b3=p["b3"].astype(jnp.float32),
        w4=p["w4"].reshape(1, D3).astype(jnp.float32),    # row layout for lane reduce
        b4=p["b4"].astype(jnp.float32),
    )


def nsfw_model(x, kparams, tile_b=1024):
    """x: [B, 768] float32 -> [B, 1] float32 (kparams from prepare_params)."""
    B = x.shape[0]
    # Tile must be a multiple of 8 (sublane); default 1024 rows fits the
    # default scoped VMEM on v5e/v6e/v7x with double-buffering to spare.
    tile_b = min(tile_b, ((B + 7) // 8) * 8)
    Bp = pl.cdiv(B, tile_b) * tile_b
    if Bp != B:
        x = jnp.pad(x, ((0, Bp - B), (0, 0)))
    x = x.astype(jnp.bfloat16)                            # halve HBM traffic for x
    grid = (Bp // tile_b,)

    def resident(shape):                                  # weights pinned in VMEM
        return pl.BlockSpec(shape, lambda i: (0, 0))

    p = kparams
    flops = 2 * Bp * (D_IN * D1P + D1P * D2 + D2 * D3 + D3)
    bytes_accessed = (Bp * D_IN * 2 + Bp * D_OUT * 4
                      + sum(int(v.size) * v.dtype.itemsize for v in p.values()))

    out = pl.pallas_call(
        nsfw_kernel,
        out_shape=jax.ShapeDtypeStruct((Bp, D_OUT), jnp.float32),
        grid=grid,
        in_specs=[
            pl.BlockSpec((tile_b, D_IN), lambda i: (i, 0)),   # x streamed over batch
            resident((D_IN, D1P)), resident((1, D1P)),
            resident((D1P, D2)), resident((1, D2)),
            resident((D2, D3)), resident((1, D3)),
            resident((1, D3)), resident((1, D_OUT)),
        ],
        out_specs=pl.BlockSpec((tile_b, D_OUT), lambda i: (i, 0)),
        compiler_params=pltpu.CompilerParams(
            dimension_semantics=("parallel",),            # batch rows independent
            vmem_limit_bytes=32 * 1024 * 1024),
        cost_estimate=pl.CostEstimate(
            flops=flops, transcendentals=Bp, bytes_accessed=bytes_accessed),
    )(x, p["w1"], p["b1"], p["w2"], p["b2"], p["w3"], p["b3"], p["w4"], p["b4"])
    return out[:B]


def make_params(key):
    """Deterministic synthetic parameters (shapes match NSFWModel.__init__),
    stored as [in, out] (transposed vs. torch's [out, in])."""
    ks = jax.random.split(key, 8)

    def lin(kw, kb, fan_in, fan_out):
        bound = 1.0 / (fan_in ** 0.5)
        w = jax.random.uniform(kw, (fan_in, fan_out), jnp.float32, -bound, bound)
        b = jax.random.uniform(kb, (1, fan_out), jnp.float32, -bound, bound)
        return w, b

    w1, b1 = lin(ks[0], ks[1], D_IN, D1)
    w2, b2 = lin(ks[2], ks[3], D1, D2)
    w3, b3 = lin(ks[4], ks[5], D2, D3)
    w4, b4 = lin(ks[6], ks[7], D3, D_OUT)

    return dict(
        # Normalization buffers: mean=zeros, variance=ones (as in __init__)
        mean=jnp.zeros((1, D_IN), jnp.float32),
        var=jnp.ones((1, D_IN), jnp.float32),
        w1=w1, b1=b1, w2=w2, b2=b2, w3=w3, b3=b3, w4=w4, b4=b4,
    )


def reference(x, p):
    """Pure-JAX f32 reference of the PyTorch forward pass."""
    h = (x - p["mean"]) / jnp.sqrt(p["var"])
    h = jnp.maximum(h @ p["w1"] + p["b1"], 0.0)
    h = jnp.maximum(h @ p["w2"] + p["b2"], 0.0)
    h = jnp.maximum(h @ p["w3"] + p["b3"], 0.0)
    return jax.nn.sigmoid(h @ p["w4"] + p["b4"])


if __name__ == "__main__":
    key = jax.random.PRNGKey(0)
    k_x, k_p = jax.random.split(key)

    B = 8
    x = jax.random.normal(k_x, (B, D_IN), jnp.float32)
    params = make_params(k_p)
    kparams = prepare_params(params)

    out = jax.block_until_ready(nsfw_model(x, kparams))
    ref = reference(x, params)
    assert out.shape == (B, D_OUT)
    # bf16 matmul operands (f32 accumulate) => relaxed tolerance vs f32 reference.
    assert jnp.allclose(out, ref, atol=2e-2, rtol=2e-2), "mismatch vs JAX reference"

    # Exercise the non-multiple-of-tile / padding path.
    B2 = 13
    x2 = jax.random.normal(k_x, (B2, D_IN), jnp.float32)
    out2 = jax.block_until_ready(nsfw_model(x2, kparams))
    assert out2.shape == (B2, D_OUT)
    assert jnp.allclose(out2, reference(x2, params), atol=2e-2, rtol=2e-2)

    print("KERNEL_OK")
</pallas_src>

<mosaic_0001>
module attributes {stable_mosaic.version = 11 : i64} {
  func.func @nsfw_kernel(%arg0: i32, %arg1: memref<8x768xbf16, #tpu.memory_space<vmem>>, %arg2: memref<768x128xbf16, #tpu.memory_space<vmem>>, %arg3: memref<1x128xf32, #tpu.memory_space<vmem>>, %arg4: memref<128x512xbf16, #tpu.memory_space<vmem>>, %arg5: memref<1x512xf32, #tpu.memory_space<vmem>>, %arg6: memref<512x256xbf16, #tpu.memory_space<vmem>>, %arg7: memref<1x256xf32, #tpu.memory_space<vmem>>, %arg8: memref<1x256xf32, #tpu.memory_space<vmem>>, %arg9: memref<1x1xf32, #tpu.memory_space<vmem>>, %arg10: memref<8x1xf32, #tpu.memory_space<vmem>>) attributes {dimension_semantics = [#tpu.dimension_semantics<parallel>], iteration_bounds = array<i64: 1>, scalar_prefetch = 0 : i64, scratch_operands = 0 : i64, tpu.core_type = #tpu.core_type<tc>, window_params = [{transform_indices = @transform_0, window_bounds = array<i64: 8, 768>}, {pipeline_mode = #tpu.pipeline_mode<synchronous>, transform_indices = @transform_1, window_bounds = array<i64: 768, 128>}, {pipeline_mode = #tpu.pipeline_mode<synchronous>, transform_indices = @transform_2, window_bounds = array<i64: 1, 128>}, {pipeline_mode = #tpu.pipeline_mode<synchronous>, transform_indices = @transform_3, window_bounds = array<i64: 128, 512>}, {pipeline_mode = #tpu.pipeline_mode<synchronous>, transform_indices = @transform_4, window_bounds = array<i64: 1, 512>}, {pipeline_mode = #tpu.pipeline_mode<synchronous>, transform_indices = @transform_5, window_bounds = array<i64: 512, 256>}, {pipeline_mode = #tpu.pipeline_mode<synchronous>, transform_indices = @transform_6, window_bounds = array<i64: 1, 256>}, {pipeline_mode = #tpu.pipeline_mode<synchronous>, transform_indices = @transform_7, window_bounds = array<i64: 1, 256>}, {pipeline_mode = #tpu.pipeline_mode<synchronous>, transform_indices = @transform_8, window_bounds = array<i64: 1, 1>}, {transform_indices = @transform_9, window_bounds = array<i64: 8, 1>}]} {
    %c0 = arith.constant 0 : index
    %c0_0 = arith.constant 0 : index
    %0 = vector.load %arg1[%c0, %c0_0] : memref<8x768xbf16, #tpu.memory_space<vmem>>, vector<8x768xbf16>
    %c0_1 = arith.constant 0 : index
    %c0_2 = arith.constant 0 : index
    %1 = vector.load %arg2[%c0_1, %c0_2] : memref<768x128xbf16, #tpu.memory_space<vmem>>, vector<768x128xbf16>
    %cst = arith.constant dense<0.000000e+00> : vector<8x128xf32>
    %2 = tpu.matmul %0, %1, %cst {dimension_numbers = #tpu.dot_dimension_numbers<[1], [0], [0], [1], [0, 0, 1, 1], [], []>} : vector<8x768xbf16>, vector<768x128xbf16>, vector<8x128xf32> -> vector<8x128xf32>
    %c0_3 = arith.constant 0 : index
    %c0_4 = arith.constant 0 : index
    %3 = vector.load %arg3[%c0_3, %c0_4] : memref<1x128xf32, #tpu.memory_space<vmem>>, vector<1x128xf32>
    %4 = vector.broadcast %3 : vector<1x128xf32> to vector<8x128xf32>
    %5 = arith.addf %2, %4 : vector<8x128xf32>
    %cst_5 = arith.constant 0.000000e+00 : f32
    %6 = vector.broadcast %cst_5 : f32 to vector<8x128xf32>
    %7 = arith.maximumf %5, %6 : vector<8x128xf32>
    %8 = arith.truncf %7 : vector<8x128xf32> to vector<8x128xbf16>
    %c0_6 = arith.constant 0 : index
    %c0_7 = arith.constant 0 : index
    %9 = vector.load %arg4[%c0_6, %c0_7] : memref<128x512xbf16, #tpu.memory_space<vmem>>, vector<128x512xbf16>
    %cst_8 = arith.constant dense<0.000000e+00> : vector<8x512xf32>
    %10 = tpu.matmul %8, %9, %cst_8 {dimension_numbers = #tpu.dot_dimension_numbers<[1], [0], [0], [1], [0, 0, 1, 1], [], []>} : vector<8x128xbf16>, vector<128x512xbf16>, vector<8x512xf32> -> vector<8x512xf32>
    %c0_9 = arith.constant 0 : index
    %c0_10 = arith.constant 0 : index
    %11 = vector.load %arg5[%c0_9, %c0_10] : memref<1x512xf32, #tpu.memory_space<vmem>>, vector<1x512xf32>
    %12 = vector.broadcast %11 : vector<1x512xf32> to vector<8x512xf32>
    %13 = arith.addf %10, %12 : vector<8x512xf32>
    %cst_11 = arith.constant 0.000000e+00 : f32
    %14 = vector.broadcast %cst_11 : f32 to vector<8x512xf32>
    %15 = arith.maximumf %13, %14 : vector<8x512xf32>
    %16 = arith.truncf %15 : vector<8x512xf32> to vector<8x512xbf16>
    %c0_12 = arith.constant 0 : index
    %c0_13 = arith.constant 0 : index
    %17 = vector.load %arg6[%c0_12, %c0_13] : memref<512x256xbf16, #tpu.memory_space<vmem>>, vector<512x256xbf16>
    %cst_14 = arith.constant dense<0.000000e+00> : vector<8x256xf32>
    %18 = tpu.matmul %16, %17, %cst_14 {dimension_numbers = #tpu.dot_dimension_numbers<[1], [0], [0], [1], [0, 0, 1, 1], [], []>} : vector<8x512xbf16>, vector<512x256xbf16>, vector<8x256xf32> -> vector<8x256xf32>
    %c0_15 = arith.constant 0 : index
    %c0_16 = arith.constant 0 : index
    %19 = vector.load %arg7[%c0_15, %c0_16] : memref<1x256xf32, #tpu.memory_space<vmem>>, vector<1x256xf32>
    %20 = vector.broadcast %19 : vector<1x256xf32> to vector<8x256xf32>
    %21 = arith.addf %18, %20 : vector<8x256xf32>
    %cst_17 = arith.constant 0.000000e+00 : f32
    %22 = vector.broadcast %cst_17 : f32 to vector<8x256xf32>
    %23 = arith.maximumf %21, %22 : vector<8x256xf32>
    %c0_18 = arith.constant 0 : index
    %c0_19 = arith.constant 0 : index
    %24 = vector.load %arg8[%c0_18, %c0_19] : memref<1x256xf32, #tpu.memory_space<vmem>>, vector<1x256xf32>
    %25 = vector.broadcast %24 : vector<1x256xf32> to vector<8x256xf32>
    %26 = arith.mulf %23, %25 : vector<8x256xf32>
    %cst_20 = arith.constant dense<0.000000e+00> : vector<8xf32>
    %27 = vector.multi_reduction <add>, %26, %cst_20 [1] : vector<8x256xf32> to vector<8xf32>
    %28 = vector.shape_cast %27 : vector<8xf32> to vector<8x1xf32>
    %c0_21 = arith.constant 0 : index
    %c0_22 = arith.constant 0 : index
    %29 = vector.load %arg9[%c0_21, %c0_22] : memref<1x1xf32, #tpu.memory_space<vmem>>, vector<1x1xf32>
    %30 = vector.broadcast %29 : vector<1x1xf32> to vector<8x1xf32>
    %31 = arith.addf %28, %30 : vector<8x1xf32>
    %32 = math.absf %31 : vector<8x1xf32>
    %cst_23 = arith.constant 0.000000e+00 : f32
    %33 = vector.broadcast %cst_23 : f32 to vector<8x1xf32>
    %34 = arith.subf %33, %32 : vector<8x1xf32>
    %35 = math.exp %34 : vector<8x1xf32>
    %cst_24 = arith.constant 1.000000e+00 : f32
    %36 = vector.broadcast %cst_24 : f32 to vector<8x1xf32>
    %37 = arith.addf %36, %35 : vector<8x1xf32>
    %cst_25 = arith.constant 1.000000e+00 : f32
    %38 = vector.broadcast %cst_25 : f32 to vector<8x1xf32>
    %39 = arith.divf %38, %37 : vector<8x1xf32>
    %cst_26 = arith.constant 0.000000e+00 : f32
    %40 = vector.broadcast %cst_26 : f32 to vector<8x1xf32>
    %41 = arith.cmpf oge, %31, %40 : vector<8x1xf32>
    %42 = arith.mulf %35, %39 : vector<8x1xf32>
    %43 = arith.select %41, %39, %42 : vector<8x1xi1>, vector<8x1xf32>
    %c0_27 = arith.constant 0 : index
    %c0_28 = arith.constant 0 : index
    %44 = vector.load %arg10[%c0_27, %c0_28] : memref<8x1xf32, #tpu.memory_space<vmem>>, vector<8x1xf32>
    tpu.vector_store %arg10[%c0_27, %c0_28], %43 {strides = array<i32>} : memref<8x1xf32, #tpu.memory_space<vmem>>, vector<8x1xf32>,
    return
  }
  func.func @transform_0(%arg0: i32) -> (i32, i32) {
    %c0_i32 = arith.constant 0 : i32
    %c0_i32_0 = arith.constant 0 : i32
    return %arg0, %c0_i32 : i32, i32
  }
  func.func @transform_1(%arg0: i32) -> (i32, i32) {
    %c0_i32 = arith.constant 0 : i32
    %c0_i32_0 = arith.constant 0 : i32
    %c0_i32_1 = arith.constant 0 : i32
    return %c0_i32, %c0_i32_0 : i32, i32
  }
  func.func @transform_2(%arg0: i32) -> (i32, i32) {
    %c0_i32 = arith.constant 0 : i32
    %c0_i32_0 = arith.constant 0 : i32
    %c0_i32_1 = arith.constant 0 : i32
    return %c0_i32, %c0_i32_0 : i32, i32
  }
  func.func @transform_3(%arg0: i32) -> (i32, i32) {
    %c0_i32 = arith.constant 0 : i32
    %c0_i32_0 = arith.constant 0 : i32
    %c0_i32_1 = arith.constant 0 : i32
    return %c0_i32, %c0_i32_0 : i32, i32
  }
  func.func @transform_4(%arg0: i32) -> (i32, i32) {
    %c0_i32 = arith.constant 0 : i32
    %c0_i32_0 = arith.constant 0 : i32
    %c0_i32_1 = arith.constant 0 : i32
    return %c0_i32, %c0_i32_0 : i32, i32
  }
  func.func @transform_5(%arg0: i32) -> (i32, i32) {
    %c0_i32 = arith.constant 0 : i32
    %c0_i32_0 = arith.constant 0 : i32
    %c0_i32_1 = arith.constant 0 : i32
    return %c0_i32, %c0_i32_0 : i32, i32
  }
  func.func @transform_6(%arg0: i32) -> (i32, i32) {
    %c0_i32 = arith.constant 0 : i32
    %c0_i32_0 = arith.constant 0 : i32
    %c0_i32_1 = arith.constant 0 : i32
    return %c0_i32, %c0_i32_0 : i32, i32
  }
  func.func @transform_7(%arg0: i32) -> (i32, i32) {
    %c0_i32 = arith.constant 0 : i32
    %c0_i32_0 = arith.constant 0 : i32
    %c0_i32_1 = arith.constant 0 : i32
    return %c0_i32, %c0_i32_0 : i32, i32
  }
  func.func @transform_8(%arg0: i32) -> (i32, i32) {
    %c0_i32 = arith.constant 0 : i32
    %c0_i32_0 = arith.constant 0 : i32
    %c0_i32_1 = arith.constant 0 : i32
    return %c0_i32, %c0_i32_0 : i32, i32
  }
  func.func @transform_9(%arg0: i32) -> (i32, i32) {
    %c0_i32 = arith.constant 0 : i32
    %c0_i32_0 = arith.constant 0 : i32
    return %arg0, %c0_i32 : i32, i32
  }
}

</mosaic_0001>

<bundles_post_ra>
// kernel: tpu_custom_call.1
= control target key start
LH: loop header
LB: loop body
LE: loop exit
PB: predicated region body
PF: predicated region fallthrough
CT: control target
= control target key end

     0   :  { %s2372_s0 = inlined_call_operand.hbm [shape: bf16[8,768], index: 0, kind: input, shape index: {}]   ;;  %s2373_s1 = inlined_call_operand.hbm [shape: bf16[768,128], index: 1, kind: input, shape index: {}]   ;;  %s2374_s2 = inlined_call_operand.hbm [shape: f32[1,128], index: 2, kind: input, shape index: {}]   ;;  %s2375_s3 = inlined_call_operand.hbm [shape: bf16[128,512], index: 3, kind: input, shape index: {}]   ;;  %s2376_s4 = inlined_call_operand.vmem [shape: f32[1,512], index: 4, kind: input, shape index: {}]   ;;  %s2377_s5 = inlined_call_operand.hbm [shape: bf16[512,256], index: 5, kind: input, shape index: {}]   ;;  %s2378_s6 = inlined_call_operand.vmem [shape: f32[1,256], index: 6, kind: input, shape index: {}]   ;;  %s2379_s7 = inlined_call_operand.vmem [shape: f32[1,256], index: 7, kind: input, shape index: {}]   ;;  %s2380_s8 = inlined_call_operand.<no memory space> [shape: f32[1,1], index: 8, kind: input, shape index: {}]   ;;  %s2381_s9 = inlined_call_operand.vmem [shape: f32[8,1], index: 9, kind: output, shape index: {}]  }
   0x1   :  { %v14_v0 = vstv %s2380_s8 }
   0x2   :  { %15 = vst [vmem:[#allocation2] sm:$0x1] %v14_v0 }
   0x3   :  { %16 = vsyncpa [#allocation4], 0 }
   0x4   :  { %17 = vsyncpa [#allocation6], 0  ;;  %s34_s13 = sshll.u32 %s2373_s1, 4  ;;  %s35_s13 = int_to_ptr.hbm [resolvable:$true] %s34_s13 }
   0x5   :  { %18 = vsyncpa [#allocation9], 0  ;;  %s2269_s14 = smov [#allocation5]   ;;  %s58_s18 = sshll.u32 %s2375_s3, 4  ;;  %s59_s18 = int_to_ptr.hbm [resolvable:$true] %s58_s18 }
   0x6   :  { %s36_s15 = sshll.u32 %s2269_s14, 4  ;;  %s2270_s19 = smov 64   ;;  %s37_s15 = int_to_ptr.vmem [resolvable:$true] %s36_s15 }
   0x7   :  { %s2271_s20 = smov 4   ;;  %s2272_s8 = smov [#allocation8]  }
   0x8   :  { %42 = dma.hbm_to_vmem [thread:$0]  %s35_s13, 6144, %s37_s15, [#allocation6], %s2270_s19, %s2270_s19, %s2271_s20  }
   0x9   :  { %s60_s21 = sshll.u32 %s2272_s8, 4  ;;  %s2273_s22 = smov 256   ;;  %s61_s21 = int_to_ptr.vmem [resolvable:$true] %s60_s21 }
   0xa   :  { %s2274_s23 = smov 16   ;;  %s24_s25 = sshll.u32 %s2372_s0, 4  ;;  %s25_s25 = int_to_ptr.hbm [resolvable:$true] %s24_s25 }
   0xb   :  { %66 = dma.hbm_to_vmem [thread:$0]  %s59_s18, 4096, %s61_s21, [#allocation9], %s2273_s22, %s2273_s22, %s2274_s23  }
   0xc   :  { %s2275_s26 = smov [#allocation3]   ;;  %s48_s29 = sshll.u32 %s2374_s2, 4  ;;  %s49_s29 = int_to_ptr.hbm [resolvable:$true] %s48_s29 }
   0xd   :  { %s26_s27 = sshll.u32 %s2275_s26, 4  ;;  %s2276_s30 = smov [#allocation7]   ;;  %s27_s27 = int_to_ptr.vmem [resolvable:$true] %s26_s27 }
   0xe   :  { %29 = dma.hbm_to_vmem [thread:$0]  %s25_s25, 384, %s27_s27, [#allocation4]  }
   0xf   :  { %s50_s10 = sshll.u32 %s2276_s30, 4  ;;  %s73_s13 = sshll.u32 %s2377_s5, 4  ;;  %s51_s10 = int_to_ptr.vmem [resolvable:$true] %s50_s10  ;;  %s74_s13 = int_to_ptr.hbm [resolvable:$true] %s73_s13 }
  0x10   :  { %53 = dma.hbm_to_vmem [thread:$0]  %s49_s29, 16, %s51_s10, [#allocation6]  }
  0x11   :  { %s2277_s0 = smov [#allocation10]   ;;  %s2278_s15 = smov 128  }
  0x12   :  { %s75_s14 = sshll.u32 %s2277_s0, 4  ;;  %s2279_s16 = smov 8   ;;  %s76_s14 = int_to_ptr.vmem [resolvable:$true] %s75_s14 }
  0x13   :  { %81 = dma.hbm_to_vmem [thread:$0]  %s74_s13, 8192, %s76_s14, [#allocation9], %s2278_s15, %s2278_s15, %s2279_s16  }
  0x14   :  { %2263 = dma.done.wait [#allocation4], 384  }
  0x15   :  { %2264 = vsyncadd [#allocation4], 4294966912 }
  0x16   :  { %2265 = dma.done.wait [#allocation6], 6160  }
  0x17   :  { %2266 = vsyncadd [#allocation6], 4294961136 }
  0x18   :  { %2267 = dma.done.wait [#allocation9], 12288  }
  0x19   :  { %2268 = vsyncadd [#allocation9], 4294955008  ;;  %v1989_v1 = vld [vmem:[#allocation5 + $0x38] sm:$0xff]  ;;  %v1988_v3 = vld [vmem:[#allocation5 + $0x30] sm:$0xff]  ;;  %vm1397_vm4 = vcmask 7168  }
  0x1a   :  { %v1997_v2 = vld [vmem:[#allocation5 + $0x78] sm:$0xff]  ;;  %520 = vmatpush.bf16.msra.mxu0 %v1989_v1  ;;  %v1996_v4 = vld [vmem:[#allocation5 + $0x70] sm:$0xff]  ;;  %v1987_v9 = vld [vmem:[#allocation5 + $0x28] sm:$0xff] }
  0x1b   :  { %533 = vmatpush.bf16.msra.mxu1 %v1997_v2  ;;  %v2005_v5 = vld [vmem:[#allocation5 + $0xb8] sm:$0xff]  ;;  %v2004_v7 = vld [vmem:[#allocation5 + $0xb0] sm:$0xff]  ;;  %v1995_v10 = vld [vmem:[#allocation5 + $0x68] sm:$0xff] }
  0x1c   :  { %v2013_v6 = vld [vmem:[#allocation5 + $0xf8] sm:$0xff]  ;;  %546 = vmatpush.bf16.msra.mxu2 %v2005_v5  ;;  %v2012_v8 = vld [vmem:[#allocation5 + $0xf0] sm:$0xff]  ;;  %v2003_v11 = vld [vmem:[#allocation5 + $0xa8] sm:$0xff] }
  0x1d   :  { %559 = vmatpush.bf16.msra.mxu3 %v2013_v6  ;;  %v2011_v12 = vld [vmem:[#allocation5 + $0xe8] sm:$0xff]  ;;  %v1986_v13 = vld [vmem:[#allocation5 + $0x20] sm:$0xff]  ;;  %v1985_v17 = vld [vmem:[#allocation5 + $0x18] sm:$0xff] }
  0x1e   :  { %521 = vmatpush.bf16.msra.mxu0 %v1988_v3  ;;  %v1994_v14 = vld [vmem:[#allocation5 + $0x60] sm:$0xff]  ;;  %v1993_v18 = vld [vmem:[#allocation5 + $0x58] sm:$0xff]  ;;  %v1984_v21 = vld [vmem:[#allocation5 + $0x10] sm:$0xff] }
  0x1f   :  { %534 = vmatpush.bf16.msra.mxu1 %v1996_v4  ;;  %v2002_v15 = vld [vmem:[#allocation5 + $0xa0] sm:$0xff]  ;;  %v2001_v19 = vld [vmem:[#allocation5 + $0x98] sm:$0xff]  ;;  %v1992_v22 = vld [vmem:[#allocation5 + $0x50] sm:$0xff] }
  0x20   :  { %547 = vmatpush.bf16.msra.mxu2 %v2004_v7  ;;  %v2010_v16 = vld [vmem:[#allocation5 + $0xe0] sm:$0xff]  ;;  %v2009_v20 = vld [vmem:[#allocation5 + $0xd8] sm:$0xff]  ;;  %v2000_v23 = vld [vmem:[#allocation5 + $0x90] sm:$0xff] }
  0x21   :  { %560 = vmatpush.bf16.msra.mxu3 %v2012_v8  ;;  %v2008_v24 = vld [vmem:[#allocation5 + $0xd0] sm:$0xff]  ;;  %v1983_v25 = vld [vmem:[#allocation5 + $0x8] sm:$0xff]  ;;  %v1982_v33 = vld [vmem:[#allocation5] sm:$0xff] }
  0x22   :  { %522 = vmatpush.bf16.msra.mxu0 %v1987_v9  ;;  %v1991_v26 = vld [vmem:[#allocation5 + $0x48] sm:$0xff]  ;;  %v109_v32 = vld [vmem:[#allocation3 + $0x8] sm:$0xff]  ;;  %v1990_v34 = vld [vmem:[#allocation5 + $0x40] sm:$0xff] }
  0x23   :  { %535 = vmatpush.bf16.msra.mxu1 %v1995_v10  ;;  %v108_v27 = vld [vmem:[#allocation3] sm:$0xff]  ;;  %v2021_v35 = vld [vmem:[#allocation5 + $0x138] sm:$0xff]  ;;  %v1998_v37 = vld [vmem:[#allocation5 + $0x80] sm:$0xff]  ;;  %v216_v38 = vunpack.c.l.b16 %v109_v32  ;;  %v217_v41 = vunpack.c.h.b16 %v109_v32 }
  0x24   :  { %548 = vmatpush.bf16.msra.mxu2 %v2003_v11  ;;  %v1999_v28 = vld [vmem:[#allocation5 + $0x88] sm:$0xff]  ;;  %v214_v29 = vunpack.c.l.b16 %v108_v27  ;;  %v215_v31 = vunpack.c.h.b16 %v108_v27  ;;  %v2029_v36 = vld [vmem:[#allocation5 + $0x178] sm:$0xff]  ;;  %v2006_v42 = vld [vmem:[#allocation5 + $0xc0] sm:$0xff] }
  0x25   :  { %561 = vmatpush.bf16.msra.mxu3 %v2011_v12  ;;  %v2007_v30 = vld [vmem:[#allocation5 + $0xc8] sm:$0xff]  ;;  %v2020_v43 = vld [vmem:[#allocation5 + $0x130] sm:$0xff]  ;;  %v222_v45 = vpack.c.b16 %v216_v38, %v216_v38  ;;  %v223_v46 = vpack.c.b16 %v217_v41, %v217_v41  ;;  %v2018_v49 = vld [vmem:[#allocation5 + $0x120] sm:$0xff] }
  0x26   :  { %523 = vmatpush.bf16.msra.mxu0 %v1986_v13  ;;  %v220_v39 = vpack.c.b16 %v214_v29, %v214_v29  ;;  %v221_v40 = vpack.c.b16 %v215_v31, %v215_v31  ;;  %v2028_v44 = vld [vmem:[#allocation5 + $0x170] sm:$0xff]  ;;  %v2019_v47 = vld [vmem:[#allocation5 + $0x128] sm:$0xff]  ;;  %v2026_v50 = vld [vmem:[#allocation5 + $0x160] sm:$0xff] }
  0x27   :  { %536 = vmatpush.bf16.msra.mxu1 %v1994_v14  ;;  %v2027_v48 = vld [vmem:[#allocation5 + $0x168] sm:$0xff]  ;;  %v2017_v51 = vld [vmem:[#allocation5 + $0x118] sm:$0xff]  ;;  %v2016_v53 = vld [vmem:[#allocation5 + $0x110] sm:$0xff] }
  0x28   :  { %549 = vmatpush.bf16.msra.mxu2 %v2002_v15  ;;  %v2025_v52 = vld [vmem:[#allocation5 + $0x158] sm:$0xff]  ;;  %v2024_v54 = vld [vmem:[#allocation5 + $0x150] sm:$0xff]  ;;  %v2015_v55 = vld [vmem:[#allocation5 + $0x108] sm:$0xff] }
  0x29   :  { %562 = vmatpush.bf16.msra.mxu3 %v2010_v16  ;;  %v2023_v56 = vld [vmem:[#allocation5 + $0x148] sm:$0xff]  ;;  %v110_v57 = vld [vmem:[#allocation3 + $0x10] sm:$0xff]  ;;  %v2014_v60 = vld [vmem:[#allocation5 + $0x100] sm:$0xff] }
  0x2a   :  { %524 = vmatpush.bf16.msra.mxu0 %v1985_v17  ;;  %v218_v58 = vunpack.c.l.b16 %v110_v57  ;;  %v219_v59 = vunpack.c.h.b16 %v110_v57  ;;  %v2022_v61 = vld [vmem:[#allocation5 + $0x140] sm:$0xff]  ;;  %v2060_v1 = vld [vmem:[#allocation8 + $0xec] sm:$0xf0]  ;;  %v1714_v4 = vld [vmem:[#allocation8 + $0xf0] sm:$0xf0] }
  0x2b   :  { %537 = vmatpush.bf16.msra.mxu1 %v1993_v18  ;;  %v1712_v0 = vld [vmem:[#allocation8 + $0xe0] sm:$0xf]  ;;  %v2058_v2 = vld [vmem:[#allocation8 + $0xe4] sm:$0xf]  ;;  %v1720_v5 = vld [vmem:[#allocation8 + $0xe8] sm:$0xf] }
  0x2c   :  { %550 = vmatpush.bf16.msra.mxu2 %v2001_v19  ;;  %v224_v62 = vpack.c.b16 %v218_v58, %v218_v58  ;;  %v225_v63 = vpack.c.b16 %v219_v59, %v219_v59  ;;  %v1713_v3 = vor.u32 %v2060_v1, %v1712_v0  ;;  %v2061_v6 = vld [vmem:[#allocation8 + $0xf4] sm:$0xf0]  ;;  %v1717_v7 = vor.u32 %v2058_v2, %v1714_v4  ;;  %v2059_v9 = vld [vmem:[#allocation8 + $0xec] sm:$0xf]  ;;  %v1722_v10 = vld [vmem:[#allocation8 + $0xf8] sm:$0xf0] }
  0x2d   :  { %563 = vmatpush.bf16.msra.mxu3 %v2009_v20  ;;  %v1721_v8 = vor.u32 %v2061_v6, %v1720_v5  ;;  %v1696_v11 = vld [vmem:[#allocation8 + $0xc0] sm:$0xf]  ;;  %v1725_v12 = vor.u32 %v2059_v9, %v1722_v10  ;;  %v2056_v13 = vld [vmem:[#allocation8 + $0xcc] sm:$0xf0]  ;;  %v2054_v14 = vld [vmem:[#allocation8 + $0xc4] sm:$0xf] }
  0x2e   :  { %525 = vmatpush.bf16.msra.mxu0 %v1984_v21  ;;  %v1698_v15 = vld [vmem:[#allocation8 + $0xd0] sm:$0xf0]  ;;  %v1697_v16 = vor.u32 %v2056_v13, %v1696_v11  ;;  %v1704_v18 = vld [vmem:[#allocation8 + $0xc8] sm:$0xf]  ;;  %v2057_v19 = vld [vmem:[#allocation8 + $0xd4] sm:$0xf0] }
  0x2f   :  { %538 = vmatpush.bf16.msra.mxu1 %v1992_v22  ;;  %v1701_v17 = vor.u32 %v2054_v14, %v1698_v15  ;;  %v2055_v20 = vld [vmem:[#allocation8 + $0xcc] sm:$0xf]  ;;  %v1705_v21 = vor.u32 %v2057_v19, %v1704_v18  ;;  %v1706_v22 = vld [vmem:[#allocation8 + $0xd8] sm:$0xf0]  ;;  %v1682_v27 = vld [vmem:[#allocation8 + $0xb0] sm:$0xf0] }
  0x30   :  { %551 = vmatpush.bf16.msra.mxu2 %v2000_v23  ;;  %v1680_v23 = vld [vmem:[#allocation8 + $0xa0] sm:$0xf]  ;;  %v2051_v31 = vld [vmem:[#allocation8 + $0xac] sm:$0xf]  ;;  %v1690_v32 = vld [vmem:[#allocation8 + $0xb8] sm:$0xf0] }
  0x31   :  { %564 = vmatpush.bf16.msra.mxu3 %v2008_v24  ;;  %v2052_v24 = vld [vmem:[#allocation8 + $0xac] sm:$0xf0]  ;;  %v2046_v38 = vld [vmem:[#allocation8 + $0x84] sm:$0xf]  ;;  %v2049_v41 = vld [vmem:[#allocation8 + $0x94] sm:$0xf0] }
  0x32   :  { %526 = vmatpush.bf16.msra.mxu0 %v1983_v25  ;;  %v1709_v25 = vor.u32 %v2055_v20, %v1706_v22  ;;  %v1681_v29 = vor.u32 %v2052_v24, %v1680_v23  ;;  %v1632_v59 = vld [vmem:[#allocation8 + $0x40] sm:$0xf]  ;;  %v1640_v0 = vld [vmem:[#allocation8 + $0x48] sm:$0xf]  ;;  %v2041_v1 = vld [vmem:[#allocation8 + $0x54] sm:$0xf0] }
  0x33   :  { %539 = vmatpush.bf16.msra.mxu1 %v1991_v26  ;;  %v2050_v26 = vld [vmem:[#allocation8 + $0xa4] sm:$0xf]  ;;  %v2039_v2 = vld [vmem:[#allocation8 + $0x4c] sm:$0xf]  ;;  %v1641_v6 = vor.u32 %v2041_v1, %v1640_v0  ;;  %v2036_v9 = vld [vmem:[#allocation8 + $0x2c] sm:$0xf0] }
  0x34   :  { %552 = vmatpush.bf16.msra.mxu2 %v1999_v28  ;;  %v1688_v28 = vld [vmem:[#allocation8 + $0xa8] sm:$0xf]  ;;  %v2034_v10 = vld [vmem:[#allocation8 + $0x24] sm:$0xf]  ;;  %v2037_v14 = vld [vmem:[#allocation8 + $0x34] sm:$0xf0] }
  0x35   :  { %565 = vmatpush.bf16.msra.mxu3 %v2007_v30  ;;  %v2053_v30 = vld [vmem:[#allocation8 + $0xb4] sm:$0xf0]  ;;  %v1624_v13 = vld [vmem:[#allocation8 + $0x28] sm:$0xf]  ;;  %v1626_v18 = vld [vmem:[#allocation8 + $0x38] sm:$0xf0] }
  0x36   :  { %527 = vmatpush.bf16.msra.mxu0 %v1982_v33  ;;  %v1685_v33 = vor.u32 %v2050_v26, %v1682_v27  ;;  %v1600_v22 = vld [vmem:[#allocation8] sm:$0xf]  ;;  %v2032_v23 = vld [vmem:[#allocation8 + $0xc] sm:$0xf0]  ;;  %v2030_v24 = vld [vmem:[#allocation8 + $0x4] sm:$0xf] }
  0x37   :  { %540 = vmatpush.bf16.msra.mxu1 %v1990_v34  ;;  %v1689_v34 = vor.u32 %v2053_v30, %v1688_v28  ;;  %v1602_v26 = vld [vmem:[#allocation8 + $0x10] sm:$0xf0]  ;;  %v1608_v27 = vld [vmem:[#allocation8 + $0x8] sm:$0xf]  ;;  %v2033_v28 = vld [vmem:[#allocation8 + $0x14] sm:$0xf0] }
  0x38   :  { %553 = vmatpush.bf16.msra.mxu2 %v1998_v37  ;;  %v2048_v37 = vld [vmem:[#allocation8 + $0x8c] sm:$0xf0]  ;;  %v1609_v30 = vor.u32 %v2033_v28, %v1608_v27  ;;  %v1840_v0 = vld [vmem:[#allocation10 + $0xe0] sm:$0xf]  ;;  %v2091_v1 = vld [vmem:[#allocation10 + $0xe4] sm:$0xf0] }
  0x39   :  { %528 = vmatmul.bf16.vlgmr.msra.gmra.mxu0 %v220_v39  ;;  %566 = vmatpush.bf16.msra.mxu3 %v2006_v42  ;;  %v1666_v39 = vld [vmem:[#allocation8 + $0x90] sm:$0xf0]  ;;  %v2101_v27 = vld [vmem:[#allocation10 + $0x134] sm:$0xf0]  ;;  %v1944_v28 = vld [vmem:[#allocation10 + $0x1b0] sm:$0xf] }
  0x3a   :  { %572 = vmatpush.bf16.msrb.mxu0 %v2021_v35  ;;  %541 = vmatmul.bf16.vlgmr.msra.gmra.mxu1 %v221_v40  ;;  %v1693_v35 = vor.u32 %v2051_v31, %v1690_v32  ;;  %v1672_v40 = vld [vmem:[#allocation8 + $0x88] sm:$0xf]  ;;  %v2031_v31 = vld [vmem:[#allocation8 + $0xc] sm:$0xf]  ;;  %v1610_v32 = vld [vmem:[#allocation8 + $0x18] sm:$0xf0] }
  0x3b   :  { %585 = vmatpush.bf16.msrb.mxu1 %v2029_v36  ;;  %554 = vmatmul.bf16.vlgmr.msra.gmra.mxu2 %v222_v45  ;;  %v1664_v36 = vld [vmem:[#allocation8 + $0x80] sm:$0xf]  ;;  %v1669_v45 = vor.u32 %v2046_v38, %v1666_v39 }
  0x3c   :  { %567 = vmatmul.bf16.vlgmr.msra.gmra.mxu3 %v223_v46  ;;  %802 = vmatpush.bf16.msrb.mxu2 %v1713_v3  ;;  %v1665_v42 = vor.u32 %v2048_v37, %v1664_v36  ;;  %v1673_v46 = vor.u32 %v2049_v41, %v1672_v40  ;;  %v1642_v3 = vld [vmem:[#allocation8 + $0x58] sm:$0xf0]  ;;  %v1976_v36 = vld [vmem:[#allocation10 + $0x1f0] sm:$0xf]  ;;  %v2125_v40 = vld [vmem:[#allocation10 + $0x1f4] sm:$0xf0] }
  0x3d   :  { %815 = vmatpush.bf16.msrb.mxu3 %v1717_v7  ;;  %v1645_v7 = vor.u32 %v2039_v2, %v1642_v3  ;;  %v1904_v41 = vld [vmem:[#allocation10 + $0x160] sm:$0xf]  ;;  %v1841_v3 = vor.u32 %v2091_v1, %v1840_v0  ;;  %v1800_v0 = vld [vmem:[#allocation10 + $0x90] sm:$0xf]  ;;  %v2081_v1 = vld [vmem:[#allocation10 + $0x94] sm:$0xf0] }
  0x3e   :  { %573 = vmatpush.bf16.msrb.mxu0 %v2020_v43  ;;  %v2047_v43 = vld [vmem:[#allocation8 + $0x8c] sm:$0xf] }
  0x3f   :  { %586 = vmatpush.bf16.msrb.mxu1 %v2028_v44  ;;  %v1674_v44 = vld [vmem:[#allocation8 + $0x98] sm:$0xf0] }
  0x40   :  { %803 = vmatpush.bf16.msrb.mxu2 %v1697_v16  ;;  %v1625_v16 = vor.u32 %v2037_v14, %v1624_v13  ;;  %v2089_v13 = vld [vmem:[#allocation10 + $0xd4] sm:$0xf0] }
  0x41   :  { %816 = vmatpush.bf16.msrb.mxu3 %v1701_v17  ;;  %v2035_v17 = vld [vmem:[#allocation8 + $0x2c] sm:$0xf] }
  0x42   :  { %574 = vmatpush.bf16.msrb.mxu0 %v2019_v47  ;;  %v1648_v47 = vld [vmem:[#allocation8 + $0x60] sm:$0xf]  ;;  %v1629_v19 = vor.u32 %v2035_v17, %v1626_v18 }
  0x43   :  { %587 = vmatpush.bf16.msrb.mxu1 %v2027_v48  ;;  %v2044_v48 = vld [vmem:[#allocation8 + $0x6c] sm:$0xf0]  ;;  %v1760_v17 = vld [vmem:[#allocation10 + $0x40] sm:$0xf] }
  0x44   :  { %804 = vmatpush.bf16.msrb.mxu2 %v1681_v29  ;;  %v1605_v29 = vor.u32 %v2030_v24, %v1602_v26  ;;  %v2087_v24 = vld [vmem:[#allocation10 + $0xc4] sm:$0xf0]  ;;  %v1880_v26 = vld [vmem:[#allocation10 + $0x130] sm:$0xf] }
  0x45   :  { %817 = vmatpush.bf16.msrb.mxu3 %v1685_v33  ;;  %v1613_v33 = vor.u32 %v2031_v31, %v1610_v32  ;;  %v1752_v32 = vld [vmem:[#allocation10 + $0x30] sm:$0xf] }
  0x46   :  { %575 = vmatpush.bf16.msrb.mxu0 %v2018_v49  ;;  %v2042_v49 = vld [vmem:[#allocation8 + $0x64] sm:$0xf] }
  0x47   :  { %588 = vmatpush.bf16.msrb.mxu1 %v2026_v50  ;;  %v1677_v50 = vor.u32 %v2047_v43, %v1674_v44  ;;  %v1977_v44 = vor.u32 %v2125_v40, %v1976_v36  ;;  %v2085_v36 = vld [vmem:[#allocation10 + $0xb4] sm:$0xf0] }
  0x48   :  { %805 = vmatpush.bf16.msrb.mxu2 %v1665_v42  ;;  %v2107_v42 = vld [vmem:[#allocation10 + $0x164] sm:$0xf0] }
  0x49   :  { %818 = vmatpush.bf16.msrb.mxu3 %v1669_v45  ;;  %v1968_v45 = vld [vmem:[#allocation10 + $0x1e0] sm:$0xf] }
  0x4a   :  { %576 = vmatpush.bf16.msrb.mxu0 %v2017_v51  ;;  %v1650_v51 = vld [vmem:[#allocation8 + $0x70] sm:$0xf0] }
  0x4b   :  { %589 = vmatpush.bf16.msrb.mxu1 %v2025_v52  ;;  %v1656_v52 = vld [vmem:[#allocation8 + $0x68] sm:$0xf]  ;;  %v1653_v57 = vor.u32 %v2042_v49, %v1650_v51  ;;  %v2077_v51 = vld [vmem:[#allocation10 + $0x74] sm:$0xf0] }
  0x4d   :  { %819 = vmatpush.bf16.msrb.mxu3 %v1653_v57  ;;  %v1896_v57 = vld [vmem:[#allocation10 + $0x150] sm:$0xf] }
  0x4e   :  { %577 = vmatpush.bf16.msrb.mxu0 %v2016_v53  ;;  %v2045_v53 = vld [vmem:[#allocation8 + $0x74] sm:$0xf0] }
  0x4f   :  { %590 = vmatpush.bf16.msrb.mxu1 %v2024_v54  ;;  %v2043_v54 = vld [vmem:[#allocation8 + $0x6c] sm:$0xf]  ;;  %v1657_v58 = vor.u32 %v2045_v53, %v1656_v52  ;;  %v1848_v52 = vld [vmem:[#allocation10 + $0xf0] sm:$0xf]  ;;  %v2093_v53 = vld [vmem:[#allocation10 + $0xf4] sm:$0xf0] }
  0x52   :  { %578 = vmatpush.bf16.msrb.mxu0 %v2015_v55  ;;  %v1658_v55 = vld [vmem:[#allocation8 + $0x78] sm:$0xf0] }
  0x53   :  { %591 = vmatpush.bf16.msrb.mxu1 %v2023_v56  ;;  %v1649_v56 = vor.u32 %v2044_v48, %v1648_v47  ;;  %v1784_v47 = vld [vmem:[#allocation10 + $0x70] sm:$0xf]  ;;  %v2137_v48 = vld [vmem:[#allocation7] ss:$0 sm:$0xff] }
  0x55   :  { %806 = vmatpush.bf16.msrb.mxu2 %v1649_v56  ;;  %v1849_v56 = vor.u32 %v2093_v53, %v1848_v52  ;;  %v1864_v52 = vld [vmem:[#allocation10 + $0x110] sm:$0xf]  ;;  %v2097_v53 = vld [vmem:[#allocation10 + $0x114] sm:$0xf0] }
  0x56   :  { %579 = vmatpush.bf16.msrb.mxu0 %v2014_v60  ;;  %v2040_v60 = vld [vmem:[#allocation8 + $0x4c] sm:$0xf0] }
  0x57   :  { %592 = vmatpush.bf16.msrb.mxu1 %v2022_v61  ;;  %v2038_v61 = vld [vmem:[#allocation8 + $0x44] sm:$0xf]  ;;  %v1633_v4 = vor.u32 %v2040_v60, %v1632_v59  ;;  %v1960_v59 = vld [vmem:[#allocation10 + $0x1d0] sm:$0xf]  ;;  %v2121_v60 = vld [vmem:[#allocation10 + $0x1d4] sm:$0xf0] }
  0x59   :  { %580 = vmatmul.bf16.vlgmr.msrb.gmra.mxu0 %v224_v62  ;;  %v1661_v62 = vor.u32 %v2043_v54, %v1658_v55  ;;  %807 = vmatpush.bf16.msrb.mxu2 %v1633_v4  ;;  %v1785_v55 = vor.u32 %v2077_v51, %v1784_v47  ;;  %v1888_v4 = vld [vmem:[#allocation10 + $0x140] sm:$0xf]  ;;  %v2067_v47 = vld [vmem:[#allocation10 + $0x24] sm:$0xf0] }
  0x5a   :  { %593 = vmatmul.bf16.vlgmr.msrb.gmra.mxu1 %v225_v63  ;;  %828 = vmatpush.bf16.msra.mxu0 %v1721_v8  ;;  %v1634_v63 = vld [vmem:[#allocation8 + $0x50] sm:$0xf0]  ;;  %v1616_v8 = vld [vmem:[#allocation8 + $0x20] sm:$0xf] }
  0x5b   :  { %841 = vmatpush.bf16.msra.mxu1 %v1725_v12  ;;  %v1637_v5 = vor.u32 %v2038_v61, %v1634_v63  ;;  %v1617_v11 = vor.u32 %v2036_v9, %v1616_v8  ;;  %v1618_v12 = vld [vmem:[#allocation8 + $0x30] sm:$0xf0]  ;;  %v1776_v61 = vld [vmem:[#allocation10 + $0x60] sm:$0xf]  ;;  %v2073_v8 = vld [vmem:[#allocation10 + $0x54] sm:$0xf0] }
  0x5c   :  { %v1621_v15 = vor.u32 %v2034_v10, %v1618_v12  ;;  %v1832_v9 = vld [vmem:[#allocation10 + $0xd0] sm:$0xf]  ;;  %v2119_v12 = vld [vmem:[#allocation10 + $0x1c4] sm:$0xf0] }
  0x5d   :  { %820 = vmatpush.bf16.msrb.mxu3 %v1637_v5  ;;  %808 = vmatpush.bf16.msrb.mxu2 %v1617_v11  ;;  %v2103_v5 = vld [vmem:[#allocation10 + $0x144] sm:$0xf0]  ;;  %v1952_v11 = vld [vmem:[#allocation10 + $0x1c0] sm:$0xf] }
  0x5e   :  { %829 = vmatpush.bf16.msra.mxu0 %v1705_v21 }
  0x5f   :  { %842 = vmatpush.bf16.msra.mxu1 %v1709_v25  ;;  %v1601_v25 = vor.u32 %v2032_v23, %v1600_v22  ;;  %v2071_v22 = vld [vmem:[#allocation10 + $0x44] sm:$0xf0]  ;;  %v1824_v23 = vld [vmem:[#allocation10 + $0xc0] sm:$0xf] }
  0x60   :  { %v1825_v31 = vor.u32 %v2087_v24, %v1824_v23  ;;  %v1786_v24 = vld [vmem:[#allocation10 + $0x78] sm:$0xf0] }
  0x61   :  { %821 = vmatpush.bf16.msrb.mxu3 %v1621_v15  ;;  %809 = vmatpush.bf16.msrb.mxu2 %v1601_v25  ;;  %v1953_v25 = vor.u32 %v2119_v12, %v1952_v11  ;;  %v1801_v12 = vor.u32 %v2081_v1, %v1800_v0  ;;  %v2100_v0 = vld [vmem:[#allocation10 + $0x134] sm:$0xf]  ;;  %v1882_v1 = vld [vmem:[#allocation10 + $0x138] sm:$0xf0] }
  0x62   :  { %830 = vmatpush.bf16.msra.mxu0 %v1689_v34  ;;  %v1912_v34 = vld [vmem:[#allocation10 + $0x170] sm:$0xf] }
  0x63   :  { %843 = vmatpush.bf16.msra.mxu1 %v1693_v35  ;;  %v2109_v35 = vld [vmem:[#allocation10 + $0x174] sm:$0xf0] }
  0x64   :  { %v1913_v39 = vor.u32 %v2109_v35, %v1912_v34  ;;  %v2069_v34 = vld [vmem:[#allocation10 + $0x34] sm:$0xf0]  ;;  %v1816_v35 = vld [vmem:[#allocation10 + $0xb0] sm:$0xf] }
  0x65   :  { %822 = vmatpush.bf16.msrb.mxu3 %v1605_v29  ;;  %1252 = vmatpush.bf16.msra.mxu2 %v1785_v55  ;;  %v2117_v29 = vld [vmem:[#allocation10 + $0x1b4] sm:$0xf0]  ;;  %v1928_v55 = vld [vmem:[#allocation10 + $0x190] sm:$0xf] }
  0x66   :  { %831 = vmatpush.bf16.msra.mxu0 %v1673_v46  ;;  %v2123_v46 = vld [vmem:[#allocation10 + $0x1e4] sm:$0xf0] }
  0x67   :  { %844 = vmatpush.bf16.msra.mxu1 %v1677_v50  ;;  %v1905_v50 = vor.u32 %v2107_v42, %v1904_v41  ;;  %v1969_v54 = vor.u32 %v2123_v46, %v1968_v45  ;;  %v1936_v41 = vld [vmem:[#allocation10 + $0x1a0] sm:$0xf]  ;;  %v1753_v42 = vor.u32 %v2069_v34, %v1752_v32  ;;  %v2122_v32 = vld [vmem:[#allocation10 + $0x1e4] sm:$0xf] }
  0x68   :  { %v1744_v45 = vld [vmem:[#allocation10 + $0x20] sm:$0xf] }
  0x69   :  { %1265 = vmatpush.bf16.msra.mxu3 %v1849_v56 }
  0x6a   :  { %832 = vmatpush.bf16.msra.mxu0 %v1657_v58  ;;  %v2105_v58 = vld [vmem:[#allocation10 + $0x154] sm:$0xf0] }
  0x6b   :  { %845 = vmatpush.bf16.msra.mxu1 %v1661_v62  ;;  %v2075_v62 = vld [vmem:[#allocation10 + $0x64] sm:$0xf0]  ;;  %v1897_v2 = vor.u32 %v2105_v58, %v1896_v57  ;;  %v1745_v58 = vor.u32 %v2067_v47, %v1744_v45  ;;  %v1778_v47 = vld [vmem:[#allocation10 + $0x68] sm:$0xf0] }
  0x6c   :  { %v1777_v63 = vor.u32 %v2075_v62, %v1776_v61  ;;  %v1865_v62 = vor.u32 %v2097_v53, %v1864_v52  ;;  %v2102_v53 = vld [vmem:[#allocation10 + $0x144] sm:$0xf] }
  0x6d   :  { %1266 = vmatpush.bf16.msra.mxu3 %v1841_v3  ;;  %v1856_v3 = vld [vmem:[#allocation10 + $0x100] sm:$0xf] }
  0x6e   :  { %833 = vmatpush.bf16.msra.mxu0 %v1641_v6  ;;  %v1961_v6 = vor.u32 %v2121_v60, %v1960_v59  ;;  %1253 = vmatpush.bf16.msra.mxu2 %v1777_v63  ;;  %v1736_v60 = vld [vmem:[#allocation10 + $0x10] sm:$0xf]  ;;  %v2065_v63 = vld [vmem:[#allocation10 + $0x14] sm:$0xf0] }
  0x6f   :  { %846 = vmatpush.bf16.msra.mxu1 %v1645_v7  ;;  %v1768_v7 = vld [vmem:[#allocation10 + $0x50] sm:$0xf]  ;;  %v1737_v11 = vor.u32 %v2065_v63, %v1736_v60  ;;  %v2088_v60 = vld [vmem:[#allocation10 + $0xd4] sm:$0xf] }
  0x70   :  { %v1769_v15 = vor.u32 %v2073_v8, %v1768_v7  ;;  %v2108_v7 = vld [vmem:[#allocation10 + $0x174] sm:$0xf]  ;;  %v1914_v8 = vld [vmem:[#allocation10 + $0x178] sm:$0xf0] }
  0x72   :  { %834 = vmatpush.bf16.msra.mxu0 %v1625_v16  ;;  %v1833_v16 = vor.u32 %v2089_v13, %v1832_v9  ;;  %1254 = vmatpush.bf16.msra.mxu2 %v1769_v15  ;;  %v2124_v9 = vld [vmem:[#allocation10 + $0x1f4] sm:$0xf]  ;;  %v2063_v15 = vld [vmem:[#allocation10 + $0x4] sm:$0xf0] }
  0x73   :  { %847 = vmatpush.bf16.msra.mxu1 %v1629_v19  ;;  %v1889_v19 = vor.u32 %v2103_v5, %v1888_v4  ;;  %v2095_v4 = vld [vmem:[#allocation10 + $0x104] sm:$0xf0]  ;;  %v1920_v5 = vld [vmem:[#allocation10 + $0x180] sm:$0xf] }
  0x74   :  { %1267 = vmatpush.bf16.msra.mxu3 %v1833_v16  ;;  %v1792_v16 = vld [vmem:[#allocation10 + $0x80] sm:$0xf] }
  0x76   :  { %835 = vmatpush.bf16.msra.mxu0 %v1609_v30  ;;  %v1761_v30 = vor.u32 %v2071_v22, %v1760_v17  ;;  %v2079_v17 = vld [vmem:[#allocation10 + $0x84] sm:$0xf0]  ;;  %v1857_v22 = vor.u32 %v2095_v4, %v1856_v3  ;;  %v2116_v3 = vld [vmem:[#allocation10 + $0x1b4] sm:$0xf]  ;;  %v1946_v4 = vld [vmem:[#allocation10 + $0x1b8] sm:$0xf0] }
  0x77   :  { %848 = vmatpush.bf16.msra.mxu1 %v1613_v33  ;;  %v1881_v33 = vor.u32 %v2101_v27, %v1880_v26  ;;  %v1850_v26 = vld [vmem:[#allocation10 + $0xf8] sm:$0xf0] }
  0x78   :  { %1255 = vmatpush.bf16.msra.mxu2 %v1761_v30  ;;  %1268 = vmatpush.bf16.msra.mxu3 %v1825_v31  ;;  %v2106_v30 = vld [vmem:[#allocation10 + $0x164] sm:$0xf]  ;;  %v1906_v31 = vld [vmem:[#allocation10 + $0x168] sm:$0xf0] }
  0x7a   :  { %1278 = vmatpush.bf16.msrb.mxu0 %v1913_v39  ;;  %v2099_v39 = vld [vmem:[#allocation10 + $0x124] sm:$0xf0] }
  0x7b   :  { %1291 = vmatpush.bf16.msrb.mxu1 %v1977_v44  ;;  %v1817_v44 = vor.u32 %v2085_v36, %v1816_v35  ;;  %v1793_v35 = vor.u32 %v2079_v17, %v1792_v16  ;;  %v2068_v17 = vld [vmem:[#allocation10 + $0x34] sm:$0xf] }
  0x7c   :  { %1256 = vmatpush.bf16.msra.mxu2 %v1753_v42 }
  0x7d   :  { %1269 = vmatpush.bf16.msra.mxu3 %v1817_v44  ;;  %v1962_v44 = vld [vmem:[#allocation10 + $0x1d8] sm:$0xf0] }
  0x7e   :  { %1279 = vmatpush.bf16.msrb.mxu0 %v1905_v50  ;;  %v2083_v50 = vld [vmem:[#allocation10 + $0xa4] sm:$0xf0] }
  0x7f   :  { %1292 = vmatpush.bf16.msrb.mxu1 %v1969_v54 }
  0x80   :  { %1257 = vmatpush.bf16.msra.mxu2 %v1745_v58  ;;  %v2072_v58 = vld [vmem:[#allocation10 + $0x54] sm:$0xf] }
  0x82   :  { %1280 = vmatpush.bf16.msrb.mxu0 %v1897_v2 }
  0x83   :  { %1293 = vmatpush.bf16.msrb.mxu1 %v1961_v6  ;;  %v2111_v6 = vld [vmem:[#allocation10 + $0x184] sm:$0xf0] }
  0x84   :  { %v1921_v23 = vor.u32 %v2111_v6, %v1920_v5  ;;  %1258 = vmatpush.bf16.msra.mxu2 %v1737_v11  ;;  %v2070_v5 = vld [vmem:[#allocation10 + $0x44] sm:$0xf]  ;;  %v1762_v6 = vld [vmem:[#allocation10 + $0x48] sm:$0xf0] }
  0x85   :  { %v2098_v11 = vld [vmem:[#allocation10 + $0x124] sm:$0xf] }
  0x86   :  { %1281 = vmatpush.bf16.msrb.mxu0 %v1889_v19 }
  0x87   :  { %1294 = vmatpush.bf16.msrb.mxu1 %v1953_v25  ;;  %v2092_v25 = vld [vmem:[#allocation10 + $0xf4] sm:$0xf] }
  0x8a   :  { %1282 = vmatpush.bf16.msrb.mxu0 %v1881_v33  ;;  %v1970_v33 = vld [vmem:[#allocation10 + $0x1e8] sm:$0xf0] }
  0xb6   :  { %v2348_v20 = vpop.f32.mrf.mxu0 }
  0xb7   :  { %v2350_v21 = vpop.f32.mrf.mxu1  ;;  %v530_v10 = vadd.f32 %v2137_v48, %v2348_v20  ;;  %v1808_v48 = vld [vmem:[#allocation10 + $0xa0] sm:$0xf] }
  0xb8   :  { %v1809_v59 = vor.u32 %v2083_v50, %v1808_v48  ;;  %v2090_v50 = vld [vmem:[#allocation10 + $0xe4] sm:$0xf] }
  0xb9   :  { %v543_v20 = vadd.f32 %v2350_v21, %v530_v10  ;;  %v2115_v21 = vld [vmem:[#allocation10 + $0x1a4] sm:$0xf0]  ;;  %v1978_v10 = vld [vmem:[#allocation10 + $0x1f8] sm:$0xf0] }
  0xba   :  { %v1937_v51 = vor.u32 %v2115_v21, %v1936_v41  ;;  %1270 = vmatpush.bf16.msra.mxu3 %v1809_v59  ;;  %v1898_v41 = vld [vmem:[#allocation10 + $0x158] sm:$0xf0]  ;;  %v2120_v21 = vld [vmem:[#allocation10 + $0x1d4] sm:$0xf] }
  0xbb   :  { %v1965_v45 = vor.u32 %v2120_v21, %v1962_v44  ;;  %v1770_v59 = vld [vmem:[#allocation10 + $0x58] sm:$0xf0]  ;;  %v2064_v21 = vld [vmem:[#allocation10 + $0x14] sm:$0xf] }
  0xbc   :  { %v2080_v44 = vld [vmem:[#allocation10 + $0x94] sm:$0xf] }
  0xbe   :  { %v531_v37 = vpop.f32.mrf.mxu0  ;;  %v2352_v43 = vpop.f32.mrf.mxu2  ;;  %1271 = vmatpush.bf16.msra.mxu3 %v1801_v12  ;;  %v1874_v12 = vld [vmem:[#allocation10 + $0x128] sm:$0xf0] }
  0xbf   :  { %v544_v38 = vpop.f32.mrf.mxu1  ;;  %v2354_v49 = vpop.f32.mrf.mxu3  ;;  %v1945_v37 = vor.u32 %v2117_v29, %v1944_v28  ;;  %v556_v40 = vadd.f32 %v2352_v43, %v543_v20  ;;  %v2113_v43 = vld [vmem:[#allocation10 + $0x194] sm:$0xf0]  ;;  %v1917_v28 = vor.u32 %v2108_v7, %v1914_v8  ;;  %v1981_v29 = vor.u32 %v2124_v9, %v1978_v10  ;;  %v2086_v7 = vld [vmem:[#allocation10 + $0xc4] sm:$0xf]  ;;  %v1826_v9 = vld [vmem:[#allocation10 + $0xc8] sm:$0xf0] }
  0xc0   :  { %v1872_v38 = vld [vmem:[#allocation10 + $0x120] sm:$0xf]  ;;  %v1929_v2 = vor.u32 %v2113_v43, %v1928_v55  ;;  %v2118_v55 = vld [vmem:[#allocation10 + $0x1c4] sm:$0xf]  ;;  %v1765_v8 = vor.u32 %v2070_v5, %v1762_v6  ;;  %v1829_v10 = vor.u32 %v2086_v7, %v1826_v9 }
  0xc1   :  { %v1873_v46 = vor.u32 %v2099_v39, %v1872_v38  ;;  %1295 = vmatpush.bf16.msrb.mxu1 %v1945_v37  ;;  %v569_v54 = vadd.f32 %v2354_v49, %v556_v40  ;;  %v1853_v37 = vor.u32 %v2092_v25, %v1850_v26  ;;  %v1909_v38 = vor.u32 %v2106_v30, %v1906_v31  ;;  %v2104_v40 = vld [vmem:[#allocation10 + $0x154] sm:$0xf]  ;;  %v1866_v26 = vld [vmem:[#allocation10 + $0x118] sm:$0xf0]  ;;  %v1746_v30 = vld [vmem:[#allocation10 + $0x28] sm:$0xf0] }
  0xc2   :  { %v1973_v39 = vor.u32 %v2122_v32, %v1970_v33  ;;  %1272 = vmatpush.bf16.msra.mxu3 %v1793_v35  ;;  %v1901_v42 = vor.u32 %v2104_v40, %v1898_v41  ;;  %v2096_v25 = vld [vmem:[#allocation10 + $0x114] sm:$0xf]  ;;  %v2082_v33 = vld [vmem:[#allocation10 + $0xa4] sm:$0xf] }
  0xc3   :  { %1283 = vmatpush.bf16.msrb.mxu0 %v1873_v46  ;;  %v2074_v46 = vld [vmem:[#allocation10 + $0x64] sm:$0xf] }
  0xc4   :  { %v1781_v48 = vor.u32 %v2074_v46, %v1778_v47  ;;  %v2094_v35 = vld [vmem:[#allocation10 + $0x104] sm:$0xf]  ;;  %v1802_v46 = vld [vmem:[#allocation10 + $0x98] sm:$0xf0] }
  0xc5   :  { %1296 = vmatpush.bf16.msrb.mxu1 %v1937_v51  ;;  %v1842_v51 = vld [vmem:[#allocation10 + $0xe8] sm:$0xf0]  ;;  %v1805_v47 = vor.u32 %v2080_v44, %v1802_v46 }
  0xc6   :  { %v557_v14 = vpop.f32.mrf.mxu2  ;;  %v1845_v52 = vor.u32 %v2090_v50, %v1842_v51  ;;  %v1730_v50 = vld [vmem:[#allocation10 + $0x8] sm:$0xf0]  ;;  %v2078_v51 = vld [vmem:[#allocation10 + $0x84] sm:$0xf] }
  0xc7   :  { %v570_v18 = vpop.f32.mrf.mxu3  ;;  %1284 = vmatpush.bf16.msrb.mxu0 %v1865_v62  ;;  %v1728_v14 = vld [vmem:[#allocation10] sm:$0xf]  ;;  %v1834_v62 = vld [vmem:[#allocation10 + $0xd8] sm:$0xf0] }
  0xc8   :  { %v2076_v18 = vld [vmem:[#allocation10 + $0x74] sm:$0xf]  ;;  %v1729_v34 = vor.u32 %v2063_v15, %v1728_v14  ;;  %v1837_v63 = vor.u32 %v2088_v60, %v1834_v62  ;;  %v1877_v14 = vor.u32 %v2098_v11, %v1874_v12  ;;  %v1938_v15 = vld [vmem:[#allocation10 + $0x1a8] sm:$0xf0] }
  0xc9   :  { %1297 = vmatpush.bf16.msrb.mxu1 %v1929_v2  ;;  %v1789_v36 = vor.u32 %v2076_v18, %v1786_v24  ;;  %v1885_v2 = vor.u32 %v2100_v0, %v1882_v1  ;;  %v1754_v18 = vld [vmem:[#allocation10 + $0x38] sm:$0xf0] }
  0xca   :  { %1259 = vmatpush.bf16.msra.mxu2 %v1729_v34  ;;  %v1810_v34 = vld [vmem:[#allocation10 + $0xa8] sm:$0xf0] }
  0xcb   :  { %1285 = vmatpush.bf16.msrb.mxu0 %v1857_v22  ;;  %v1757_v22 = vor.u32 %v2068_v17, %v1754_v18  ;;  %v926_v18 = vld [vmem:[%s2378_s6] sm:$0x3] }
  0xcd   :  { %1298 = vmatpush.bf16.msrb.mxu1 %v1921_v23  ;;  %v1818_v23 = vld [vmem:[#allocation10 + $0xb8] sm:$0xf0] }
  0xd6   :  { %v581_v56 = vpop.f32.mrf.mxu0 }
  0xd7   :  { %v594_v57 = vpop.f32.mrf.mxu1  ;;  %v582_v61 = vadd.f32 %v581_v56, %v569_v54  ;;  %v1890_v54 = vld [vmem:[#allocation10 + $0x148] sm:$0xf0] }
  0xd8   :  { %v1893_v43 = vor.u32 %v2102_v53, %v1890_v54  ;;  %v1954_v56 = vld [vmem:[#allocation10 + $0x1c8] sm:$0xf0] }
  0xd9   :  { %v595_v49 = vadd.f32 %v594_v57, %v582_v61  ;;  %v1957_v57 = vor.u32 %v2118_v55, %v1954_v56  ;;  %v1773_v61 = vor.u32 %v2072_v58, %v1770_v59  ;;  %v1794_v53 = vld [vmem:[#allocation10 + $0x88] sm:$0xf0]  ;;  %v632_v55 = vld [vmem:[%s2376_s4] sm:$0xf] }
  0xda   :  { %v1797_v54 = vor.u32 %v2078_v51, %v1794_v53  ;;  %v637_v56 = vperm.slane %v632_v55, 3  ;;  %v635_v62 = vperm.slane %v632_v55, 1  ;;  %v2138_v51 = vld [vmem:[#allocation2] ss:$0 sm:$0xff] }
  0xdb   :  { %v598_v13 = vmax.f32 %v595_v49, 0.0  ;;  %v1949_v49 = vor.u32 %v2116_v3, %v1946_v4 }
  0xdd   :  { %v599_v19 = vpack.c.bf16 %v598_v13, %v598_v13  ;;  %v2114_v13 = vld [vmem:[#allocation10 + $0x1a4] sm:$0xf] }
  0xde   :  { %v583_v27 = vpop.f32.mrf.mxu0  ;;  %v1941_v16 = vor.u32 %v2114_v13, %v1938_v15 }
  0xdf   :  { %v596_v20 = vpop.f32.mrf.mxu1  ;;  %810 = vmatmul.bf16.vlgmr.msrb.gmra.mxu2 %v599_v19  ;;  %823 = vmatmul.bf16.vlgmr.msrb.gmra.mxu3 %v599_v19  ;;  %v2112_v27 = vld [vmem:[#allocation10 + $0x194] sm:$0xf] }
  0xe0   :  { %836 = vmatmul.bf16.vlgmr.msra.gmra.mxu0 %v599_v19  ;;  %849 = vmatmul.bf16.vlgmr.msra.gmra.mxu1 %v599_v19  ;;  %v2084_v19 = vld [vmem:[#allocation10 + $0xb4] sm:$0xf]  ;;  %v1869_v20 = vor.u32 %v2096_v25, %v1866_v26 }
  0xe1   :  { %1330 = vmatpush.bf16.msra.mxu0 %v1917_v28  ;;  %1343 = vmatpush.bf16.msra.mxu1 %v1981_v29  ;;  %v1821_v24 = vor.u32 %v2084_v19, %v1818_v23  ;;  %v1930_v28 = vld [vmem:[#allocation10 + $0x198] sm:$0xf0]  ;;  %v2066_v29 = vld [vmem:[#allocation10 + $0x24] sm:$0xf]  ;;  %v928_v23 = vperm.slane %v926_v18, 0 }
  0xe2   :  { %1304 = vmatpush.bf16.msrb.mxu2 %v1789_v36  ;;  %1317 = vmatpush.bf16.msrb.mxu3 %v1853_v37  ;;  %v1933_v31 = vor.u32 %v2112_v27, %v1930_v28  ;;  %v1749_v32 = vor.u32 %v2066_v29, %v1746_v30  ;;  %v1813_v36 = vor.u32 %v2082_v33, %v1810_v34  ;;  %v1858_v37 = vld [vmem:[#allocation10 + $0x108] sm:$0xf0] }
  0xe3   :  { %v1861_v40 = vor.u32 %v2094_v35, %v1858_v37 }
  0xe5   :  { %1331 = vmatpush.bf16.msra.mxu0 %v1909_v38  ;;  %1344 = vmatpush.bf16.msra.mxu1 %v1973_v39  ;;  %v2110_v38 = vld [vmem:[#allocation10 + $0x184] sm:$0xf]  ;;  %v1922_v39 = vld [vmem:[#allocation10 + $0x188] sm:$0xf0] }
  0xe6   :  { %1305 = vmatpush.bf16.msrb.mxu2 %v1781_v48  ;;  %1318 = vmatpush.bf16.msrb.mxu3 %v1845_v52  ;;  %v1925_v41 = vor.u32 %v2110_v38, %v1922_v39  ;;  %v2062_v48 = vld [vmem:[#allocation10 + $0x4] sm:$0xf] }
  0xe7   :  { %v1733_v52 = vor.u32 %v2062_v48, %v1730_v50  ;;  %v1358_v38 = vld [vmem:[%s2379_s7] sm:$0x3] }
  0xe9   :  { %1332 = vmatpush.bf16.msra.mxu0 %v1901_v42  ;;  %1345 = vmatpush.bf16.msra.mxu1 %v1965_v45  ;;  %v1738_v42 = vld [vmem:[#allocation10 + $0x18] sm:$0xf0] }
  0xea   :  { %1306 = vmatpush.bf16.msrb.mxu2 %v1773_v61  ;;  %1319 = vmatpush.bf16.msrb.mxu3 %v1837_v63  ;;  %v1741_v45 = vor.u32 %v2064_v21, %v1738_v42  ;;  %v634_v61 = vperm.slane %v632_v55, 0  ;;  %v1360_v21 = vperm.slane %v1358_v38, 0  ;;  %v1361_v42 = vperm.slane %v1358_v38, 1 }
  0xed   :  { %1333 = vmatpush.bf16.msra.mxu0 %v1893_v43  ;;  %1346 = vmatpush.bf16.msra.mxu1 %v1957_v57  ;;  %v636_v43 = vperm.slane %v632_v55, 2 }
  0xee   :  { %1307 = vmatpush.bf16.msrb.mxu2 %v1765_v8  ;;  %1320 = vmatpush.bf16.msrb.mxu3 %v1829_v10 }
  0xf1   :  { %1334 = vmatpush.bf16.msra.mxu0 %v1885_v2  ;;  %1347 = vmatpush.bf16.msra.mxu1 %v1949_v49 }
  0xf2   :  { %1308 = vmatpush.bf16.msrb.mxu2 %v1757_v22  ;;  %1321 = vmatpush.bf16.msrb.mxu3 %v1821_v24 }
  0xf5   :  { %1335 = vmatpush.bf16.msra.mxu0 %v1877_v14  ;;  %1348 = vmatpush.bf16.msra.mxu1 %v1941_v16 }
  0xf6   :  { %1309 = vmatpush.bf16.msrb.mxu2 %v1749_v32  ;;  %1322 = vmatpush.bf16.msrb.mxu3 %v1813_v36 }
  0xf9   :  { %1336 = vmatpush.bf16.msra.mxu0 %v1869_v20  ;;  %1349 = vmatpush.bf16.msra.mxu1 %v1933_v31  ;;  %v929_v31 = vperm.slane %v926_v18, 1 }
  0xfa   :  { %1310 = vmatpush.bf16.msrb.mxu2 %v1741_v45  ;;  %1323 = vmatpush.bf16.msrb.mxu3 %v1805_v47 }
  0xfd   :  { %1337 = vmatpush.bf16.msra.mxu0 %v1861_v40  ;;  %1350 = vmatpush.bf16.msra.mxu1 %v1925_v41 }
  0xfe   :  { %1311 = vmatpush.bf16.msrb.mxu2 %v1733_v52  ;;  %1324 = vmatpush.bf16.msrb.mxu3 %v1797_v54 }
 0x15d   :  { %v837_v57 = vpop.f32.mrf.mxu0  ;;  %v850_v58 = vpop.f32.mrf.mxu1 }
 0x15e   :  { %v838_v59 = vadd.f32 %v837_v57, %v636_v43  ;;  %v851_v60 = vadd.f32 %v850_v58, %v637_v56 }
 0x160   :  { %v856_v63 = vmax.f32 %v838_v59, 0.0  ;;  %v857_v0 = vmax.f32 %v851_v60, 0.0 }
 0x162   :  { %v860_v1 = vpack.c.bf16 %v856_v63, %v856_v63  ;;  %v861_v2 = vpack.c.bf16 %v857_v0, %v857_v0  ;;  %v811_v3 = vpop.f32.mrf.mxu2  ;;  %v824_v4 = vpop.f32.mrf.mxu3 }
 0x163   :  { %v812_v49 = vadd.f32 %v811_v3, %v634_v61  ;;  %v825_v5 = vadd.f32 %v824_v4, %v635_v62 }
 0x164   :  { %1286 = vmatmul.bf16.vlgmr.msrb.gmra.mxu0 %v860_v1  ;;  %1299 = vmatmul.bf16.vlgmr.msrb.gmra.mxu1 %v861_v2 }
 0x165   :  { %v854_v6 = vmax.f32 %v812_v49, 0.0  ;;  %v855_v7 = vmax.f32 %v825_v5, 0.0  ;;  %v839_v8 = vpop.f32.mrf.mxu0  ;;  %v852_v9 = vpop.f32.mrf.mxu1 }
 0x167   :  { %v858_v10 = vpack.c.bf16 %v854_v6, %v854_v6  ;;  %v859_v11 = vpack.c.bf16 %v855_v7, %v855_v7 }
 0x169   :  { %1260 = vmatmul.bf16.vlgmr.msra.gmra.mxu2 %v858_v10  ;;  %1273 = vmatmul.bf16.vlgmr.msra.gmra.mxu3 %v859_v11 }
 0x16a   :  { %v813_v12 = vpop.f32.mrf.mxu2  ;;  %v826_v13 = vpop.f32.mrf.mxu3 }
 0x174   :  { %1338 = vmatmul.bf16.vlgmr.msra.gmra.mxu0 %v860_v1  ;;  %1351 = vmatmul.bf16.vlgmr.msra.gmra.mxu1 %v861_v2 }
 0x179   :  { %1312 = vmatmul.bf16.vlgmr.msrb.gmra.mxu2 %v858_v10  ;;  %1325 = vmatmul.bf16.vlgmr.msrb.gmra.mxu3 %v859_v11 }
 0x1e1   :  { %v1287_v14 = vpop.f32.mrf.mxu0  ;;  %v1300_v15 = vpop.f32.mrf.mxu1 }
 0x1e9   :  { %v1289_v16 = vpop.f32.mrf.mxu0  ;;  %v1302_v17 = vpop.f32.mrf.mxu1 }
 0x1ec   :  { %v1261_v19 = vpop.f32.mrf.mxu2  ;;  %v1274_v22 = vpop.f32.mrf.mxu3 }
 0x1ed   :  { %v1262_v26 = vadd.f32 %v1261_v19, %v928_v23 }
 0x1ef   :  { %v1275_v28 = vadd.f32 %v1274_v22, %v1262_v26 }
 0x1f1   :  { %v1339_v24 = vpop.f32.mrf.mxu0  ;;  %v1352_v25 = vpop.f32.mrf.mxu1  ;;  %v1288_v32 = vadd.f32 %v1287_v14, %v1275_v28 }
 0x1f3   :  { %v1301_v37 = vadd.f32 %v1300_v15, %v1288_v32 }
 0x1f4   :  { %v1263_v27 = vpop.f32.mrf.mxu2  ;;  %v1276_v20 = vpop.f32.mrf.mxu3 }
 0x1f5   :  { %v1356_v41 = vmax.f32 %v1301_v37, 0.0 }
 0x1f7   :  { %v1364_v47 = vmul.f32 %v1360_v21, %v1356_v41 }
 0x1f9   :  { %v1341_v29 = vpop.f32.mrf.mxu0  ;;  %v1354_v30 = vpop.f32.mrf.mxu1 }
 0x1fc   :  { %v1313_v33 = vpop.f32.mrf.mxu2  ;;  %v1326_v34 = vpop.f32.mrf.mxu3 }
 0x1fd   :  { %v1314_v35 = vadd.f32 %v1313_v33, %v929_v31 }
 0x1ff   :  { %v1327_v36 = vadd.f32 %v1326_v34, %v1314_v35 }
 0x201   :  { %v1340_v39 = vadd.f32 %v1339_v24, %v1327_v36 }
 0x203   :  { %v1353_v40 = vadd.f32 %v1352_v25, %v1340_v39 }
 0x204   :  { %v1315_v44 = vpop.f32.mrf.mxu2  ;;  %v1328_v45 = vpop.f32.mrf.mxu3 }
 0x205   :  { %v1357_v46 = vmax.f32 %v1353_v40, 0.0 }
 0x207   :  { %v1365_v48 = vmul.f32 %v1361_v42, %v1357_v46 }
 0x209   :  { %v1366_v50 = vadd.f32 %v1365_v48, %v1364_v47 }
 0x20b   :  { %1367 = vadd.xlane.f32.xlu0 %v1366_v50 }
 0x27e   :  { %v1368_v52 = vpop.xlane.xlu0 %1367 }
 0x27f   :  { %v1373_v53 = vadd.f32 %v2138_v51, %v1368_v52 }
 0x281   :  { %v1374_v54 = vand.u32 2147483647, %v1373_v53  ;;  %vm1394_vm5 = vcmp.ge.f32.partialorder %v1373_v53, 0.0 }
 0x283   :  { %v1375_v55 = vsub.f32 0.0, %v1374_v54 }
 0x285   :  { %v1376_v43 = vmul.f32 1.442695, %v1375_v55 }
 0x287   :  { %2139 = vpow2.f32 %v1376_v43 }
 0x28d   :  { %v2140_v56 = vpop.eup %2139 }
 0x28e   :  { %v1378_v57 = vadd.f32 1.0, %v2140_v56 }
 0x290   :  { %2141 = vrcp.f32 %v1378_v57  ;;  %v1390_v61 = vand.u32 2147483648, %v1378_v57  ;;  %v1388_v63 = vand.u32 2147483647, %v1378_v57  ;;  %vm1384_vm1 = vweird.f32 %v1378_v57 }
 0x292   :  { %v1391_v1 = vor.u32 1.1754944e-38, %v1390_v61  ;;  %vm1389_vm3 = vcmp.eq.f32.partialorder %v1388_v63, 8.507059e+37 }
 0x296   :  { %v2142_v58 = vpop.eup %2141 }
 0x297   :  { %v1380_v59 = vmul.f32 %v2142_v58, %v1378_v57  ;;  %vm1385_vm0 = vweird.f32 %v2142_v58 }
 0x298   :  { %vm1386_vm2 = vmor %vm1384_vm1, %vm1385_vm0 }
 0x299   :  { %v1381_v60 = vsub.f32 1.0, %v1380_v59 }
 0x29b   :  { %v1382_v62 = vmul.f32 %v2142_v58, %v1381_v60 }
 0x29d   :  { %v1383_v0 = vadd.f32 %v2142_v58, %v1382_v62 }
 0x29f   :  { %v1387_v2 = vsel %vm1386_vm2, %v2142_v58, %v1383_v0 }
 0x2a0   :  { %v1392_v3 = vsel %vm1389_vm3, %v1391_v1, %v1387_v2 }
 0x2a1   :  { %v1395_v4 = vmul.f32 %v2140_v56, %v1392_v3 }
 0x2a3   :  { %v1396_v49 = vsel %vm1394_vm5, %v1392_v3, %v1395_v4 }
 0x2a4   :  { %1398 = vst.msk [vmem:[%s2381_s9] sm:$0xff] %vm1397_vm4, %v1396_v49 }
 0x2a5   :  { %1403 = vsyncpa [#allocation4], 1 }
 0x2a6   :  { %1404 = vsyncpa [#allocation6], 1 }
 0x2a7   :  { %1405 = vsyncpa [#allocation9], 1 }

</bundles_post_ra>
